<compile_context>
chip_gen: v7x
topology: tpu7x:2x2x1
jax: 0.10.0
libtpu: 0.0.40
codegen_flags: <defaults>
</compile_context>

<pallas_src>
import jax
import jax.numpy as jnp
from jax.experimental import pallas as pl
from jax.experimental.pallas import tpu as pltpu


def _round_up(x: int, m: int) -> int:
    return ((x + m - 1) // m) * m


def linear_kernel(x_ref, w_ref, b_ref, o_ref):
    # x_ref: (TB, Dp) VMEM tile, w_ref: (Dp, Cp) resident, b_ref: (1, Cp) resident
    acc = jnp.dot(x_ref[...], w_ref[...], preferred_element_type=jnp.float32)
    o_ref[...] = (acc + b_ref[...]).astype(o_ref.dtype)


def net_forward(x, w, b, *, tb_max: int = 256):
    """Pallas implementation of Net.forward.

    x: (B, 784) f32
    w: (num_classes, input_size) f32  (PyTorch nn.Linear weight layout)
    b: (num_classes,) f32
    returns (B, num_classes) f32
    """
    B, D = x.shape
    C, Dw = w.shape
    assert Dw == D

    # Lane-friendly padded sizes.
    Dp = _round_up(D, 128)                 # 784 -> 896 (7 x 128)
    Cp = max(128, _round_up(C, 128))       # 10  -> 128 (lane-dense output)
    TB = tb_max if B >= tb_max else _round_up(B, 8)
    Bp = _round_up(B, TB)

    # Zero-pad inputs; weight stored transposed as (Dp, Cp) for a plain x @ W_t.
    xp = jnp.zeros((Bp, Dp), jnp.float32).at[:B, :D].set(x.astype(jnp.float32))
    wtp = jnp.zeros((Dp, Cp), jnp.float32).at[:D, :C].set(w.T.astype(jnp.float32))
    bp = jnp.zeros((1, Cp), jnp.float32).at[0, :C].set(b.astype(jnp.float32))

    out = pl.pallas_call(
        linear_kernel,
        out_shape=jax.ShapeDtypeStruct((Bp, Cp), jnp.float32),
        grid_spec=pl.GridSpec(
            grid=(Bp // TB,),
            in_specs=[
                pl.BlockSpec((TB, Dp), lambda i: (i, 0)),   # streamed x tiles
                pl.BlockSpec((Dp, Cp), lambda i: (0, 0)),   # resident weight
                pl.BlockSpec((1, Cp), lambda i: (0, 0)),    # resident bias
            ],
            out_specs=pl.BlockSpec((TB, Cp), lambda i: (i, 0)),
        ),
        compiler_params=pltpu.CompilerParams(
            dimension_semantics=("parallel",),              # 2x on v7x dual-TC
        ),
    )(xp, wtp, bp)

    return out[:B, :C]


if __name__ == "__main__":
    input_size = 784
    num_classes = 10
    batch = 8

    key = jax.random.PRNGKey(0)
    kx, kw, kb = jax.random.split(key, 3)

    # Mimic nn.Linear's uniform(-1/sqrt(fan_in), 1/sqrt(fan_in)) init.
    bound = 1.0 / jnp.sqrt(jnp.float32(input_size))
    w = jax.random.uniform(kw, (num_classes, input_size), jnp.float32, -bound, bound)
    b = jax.random.uniform(kb, (num_classes,), jnp.float32, -bound, bound)

    x = jax.random.normal(kx, (batch, input_size), jnp.float32)

    out = net_forward(x, w, b)
    out = jax.block_until_ready(out)

    # Reference check in plain JAX.
    ref = x @ w.T + b
    assert out.shape == (batch, num_classes)
    assert jnp.allclose(out, ref, atol=1e-4, rtol=1e-4)

    print("KERNEL_OK")
</pallas_src>

<mosaic_0001>
module attributes {stable_mosaic.version = 11 : i64} {
  func.func @linear_kernel(%arg0: i32, %arg1: memref<8x896xf32, #tpu.memory_space<vmem>>, %arg2: memref<896x128xf32, #tpu.memory_space<vmem>>, %arg3: memref<1x128xf32, #tpu.memory_space<vmem>>, %arg4: memref<8x128xf32, #tpu.memory_space<vmem>>) attributes {dimension_semantics = [#tpu.dimension_semantics<parallel>], iteration_bounds = array<i64: 1>, scalar_prefetch = 0 : i64, scratch_operands = 0 : i64, tpu.core_type = #tpu.core_type<tc>, window_params = [{transform_indices = @transform_0, window_bounds = array<i64: 8, 896>}, {pipeline_mode = #tpu.pipeline_mode<synchronous>, transform_indices = @transform_1, window_bounds = array<i64: 896, 128>}, {pipeline_mode = #tpu.pipeline_mode<synchronous>, transform_indices = @transform_2, window_bounds = array<i64: 1, 128>}, {transform_indices = @transform_3, window_bounds = array<i64: 8, 128>}]} {
    %c0 = arith.constant 0 : index
    %c0_0 = arith.constant 0 : index
    %0 = vector.load %arg1[%c0, %c0_0] : memref<8x896xf32, #tpu.memory_space<vmem>>, vector<8x896xf32>
    %c0_1 = arith.constant 0 : index
    %c0_2 = arith.constant 0 : index
    %1 = vector.load %arg2[%c0_1, %c0_2] : memref<896x128xf32, #tpu.memory_space<vmem>>, vector<896x128xf32>
    %cst = arith.constant dense<0.000000e+00> : vector<8x128xf32>
    %2 = tpu.matmul %0, %1, %cst {dimension_numbers = #tpu.dot_dimension_numbers<[1], [0], [0], [1], [0, 0, 1, 1], [], []>} : vector<8x896xf32>, vector<896x128xf32>, vector<8x128xf32> -> vector<8x128xf32>
    %c0_3 = arith.constant 0 : index
    %c0_4 = arith.constant 0 : index
    %3 = vector.load %arg3[%c0_3, %c0_4] : memref<1x128xf32, #tpu.memory_space<vmem>>, vector<1x128xf32>
    %4 = vector.broadcast %3 : vector<1x128xf32> to vector<8x128xf32>
    %5 = arith.addf %2, %4 : vector<8x128xf32>
    %c0_5 = arith.constant 0 : index
    %c0_6 = arith.constant 0 : index
    %6 = vector.load %arg4[%c0_5, %c0_6] : memref<8x128xf32, #tpu.memory_space<vmem>>, vector<8x128xf32>
    tpu.vector_store %arg4[%c0_5, %c0_6], %5 {strides = array<i32>} : memref<8x128xf32, #tpu.memory_space<vmem>>, vector<8x128xf32>,
    return
  }
  func.func @transform_0(%arg0: i32) -> (i32, i32) {
    %c0_i32 = arith.constant 0 : i32
    %c0_i32_0 = arith.constant 0 : i32
    return %arg0, %c0_i32 : i32, i32
  }
  func.func @transform_1(%arg0: i32) -> (i32, i32) {
    %c0_i32 = arith.constant 0 : i32
    %c0_i32_0 = arith.constant 0 : i32
    %c0_i32_1 = arith.constant 0 : i32
    return %c0_i32, %c0_i32_0 : i32, i32
  }
  func.func @transform_2(%arg0: i32) -> (i32, i32) {
    %c0_i32 = arith.constant 0 : i32
    %c0_i32_0 = arith.constant 0 : i32
    %c0_i32_1 = arith.constant 0 : i32
    return %c0_i32, %c0_i32_0 : i32, i32
  }
  func.func @transform_3(%arg0: i32) -> (i32, i32) {
    %c0_i32 = arith.constant 0 : i32
    %c0_i32_0 = arith.constant 0 : i32
    return %arg0, %c0_i32 : i32, i32
  }
}

</mosaic_0001>

<bundles_post_ra>
// kernel: tpu_custom_call.1
= control target key start
LH: loop header
LB: loop body
LE: loop exit
PB: predicated region body
PF: predicated region fallthrough
CT: control target
= control target key end

     0   :  { %8 = vsyncpa [#allocation3], 0  ;;  %s904_s0 = inlined_call_operand.hbm [shape: f32[8,896], index: 0, kind: input, shape index: {}]   ;;  %s905_s1 = inlined_call_operand.hbm [shape: f32[896,128], index: 1, kind: input, shape index: {}]   ;;  %s906_s2 = inlined_call_operand.vmem [shape: f32[1,128], index: 2, kind: input, shape index: {}]   ;;  %s907_s3 = inlined_call_operand.hbm [shape: f32[8,128], index: 3, kind: output, shape index: {}]  }
   0x1   :  { %9 = vsyncpa [#allocation6], 0 }
   0x2   :  { %10 = vsyncpa [#allocation4], 0  ;;  %s822_s12 = smov [#allocation2]   ;;  %s823_s14 = smov [#allocation5]  }
   0x3   :  { %s17_s13 = sshll.u32 %s822_s12, 4  ;;  %s26_s15 = sshll.u32 %s823_s14, 4  ;;  %s18_s13 = int_to_ptr.vmem [resolvable:$true] %s17_s13  ;;  %s850_s15 = int_to_ptr.vmem [resolvable:$true] %s26_s15 }
   0x4   :  { %s750_s18 = scalar_lea.hbm %s904_s0, 896 }
   0x5   :  { %p751_p0 = scmp.ne.s32.totalorder %s904_s0, %s750_s18  ;;  %p754_p1 = scmp.lt.u32.totalorder %s750_s18, %s904_s0 }
   0x7   :  { %p756_p2 = pnand %p754_p1, %p751_p0 }
   0x9   :  { %759 = shalt.err (!%p756_p2)
}
   0xa   :  { %s760_s23 = scalar_lea.vmem %s18_s13, 896  ;;  %p765_p4 = scmp.lt.s32.totalorder %s18_s13, %s18_s13 }
   0xb   :  { %p761_p3 = scmp.ne.s32.totalorder %s18_s13, %s760_s23  ;;  %p766_p5 = scmp.lt.s32.totalorder %s760_s23, %s760_s23 }
   0xd   :  { %p767_p6 = por %p766_p5, %p765_p4 }
   0xf   :  { %p768_p7 = pnand %p767_p6, %p761_p3 }
  0x11   :  { %771 = shalt.err (!%p768_p7)
}
  0x12   :  { %20 = dma.hbm_to_vmem [thread:$0]  %s904_s0, 896, %s18_s13, [#allocation3]  }
  0x13   :  { %s772_s28 = scalar_lea.hbm %s905_s1, 14336 }
  0x14   :  { %p773_p8 = scmp.ne.s32.totalorder %s905_s1, %s772_s28  ;;  %p776_p9 = scmp.lt.u32.totalorder %s772_s28, %s905_s1 }
  0x16   :  { %p778_p10 = pnand %p776_p9, %p773_p8 }
  0x18   :  { %781 = shalt.err (!%p778_p10)
}
  0x19   :  { %s782_s6 = scalar_lea.vmem %s850_s15, 14336  ;;  %p787_p12 = scmp.lt.s32.totalorder %s850_s15, %s850_s15 }
  0x1a   :  { %p783_p11 = scmp.ne.s32.totalorder %s850_s15, %s782_s6  ;;  %p788_p13 = scmp.lt.s32.totalorder %s782_s6, %s782_s6 }
  0x1c   :  { %p789_p0 = por %p788_p13, %p787_p12 }
  0x1e   :  { %p790_p1 = pnand %p789_p0, %p783_p11 }
  0x20   :  { %793 = shalt.err (!%p790_p1)
}
  0x21   :  { %s824_s0 = smov 128   ;;  %s825_s7 = smov 8  }
  0x22   :  { %32 = dma.hbm_to_vmem [thread:$0]  %s905_s1, 14336, %s850_s15, [#allocation6], %s824_s0, %s824_s0, %s825_s7  }
  0x23   :  { %816 = dma.done.wait [#allocation3], 896  }
  0x24   :  { %817 = vsyncadd [#allocation3], 4294966400 }
  0x25   :  { %818 = dma.done.wait [#allocation6], 14336  }
  0x26   :  { %819 = vsyncadd [#allocation6], 4294952960  ;;  %v64_v0 = vld [vmem:[#allocation5 + $0x80] sm:$0xff]  ;;  %v65_v1 = vld [vmem:[#allocation5 + $0x88] sm:$0xff]  ;;  %vm827_vm0 = vmmov 0   ;;  %s829_s11 = smov [#allocation7]  }
  0x27   :  { %v48_v2 = vld [vmem:[#allocation5] sm:$0xff]  ;;  %v622_v3 = vpack.c.bf16 %v65_v1, %v64_v0  ;;  %v49_v4 = vld [vmem:[#allocation5 + $0x8] sm:$0xff]  ;;  %v66_v11 = vld [vmem:[#allocation5 + $0x90] sm:$0xff]  ;;  %s454_s12 = sshll.u32 %s829_s11, 4  ;;  %s455_s12 = int_to_ptr.vmem [resolvable:$true] %s454_s12 }
  0x28   :  { %v96_v5 = vld [vmem:[#allocation5 + $0x180] sm:$0xff]  ;;  %v97_v6 = vld [vmem:[#allocation5 + $0x188] sm:$0xff]  ;;  %v624_v7 = vpack.c.bf16 %v49_v4, %v48_v2  ;;  %v67_v13 = vld [vmem:[#allocation5 + $0x98] sm:$0xff]  ;;  %s794_s13 = scalar_lea.vmem %s455_s12, 128  ;;  %p799_p3 = scmp.lt.s32.totalorder %s455_s12, %s455_s12 }
  0x29   :  { %v654_v8 = vpack.c.bf16 %v97_v6, %v96_v5  ;;  %v80_v9 = vld [vmem:[#allocation5 + $0x100] sm:$0xff]  ;;  %v81_v10 = vld [vmem:[#allocation5 + $0x108] sm:$0xff]  ;;  %623 = vmatprep.subr.bf16.mxu0 %v622_v3  ;;  %v50_v14 = vld [vmem:[#allocation5 + $0x10] sm:$0xff]  ;;  %v626_v16 = vpack.c.bf16 %v67_v13, %v66_v11  ;;  %p795_p2 = scmp.ne.s32.totalorder %s455_s12, %s794_s13  ;;  %p800_p4 = scmp.lt.s32.totalorder %s794_s13, %s794_s13 }
  0x2a   :  { %v656_v12 = vpack.c.bf16 %v81_v10, %v80_v9  ;;  %v51_v15 = vld [vmem:[#allocation5 + $0x18] sm:$0xff]  ;;  %625 = vmatpush3.bf16.msra.mxu0 %v624_v7  ;;  %v98_v18 = vld [vmem:[#allocation5 + $0x190] sm:$0xff]  ;;  %v68_v23 = vld [vmem:[#allocation5 + $0xa0] sm:$0xff] }
  0x2b   :  { %655 = vmatprep.subr.bf16.mxu1 %v654_v8  ;;  %v628_v17 = vpack.c.bf16 %v51_v15, %v50_v14  ;;  %v99_v19 = vld [vmem:[#allocation5 + $0x198] sm:$0xff]  ;;  %v82_v20 = vld [vmem:[#allocation5 + $0x110] sm:$0xff]  ;;  %v69_v24 = vld [vmem:[#allocation5 + $0xa8] sm:$0xff]  ;;  %627 = vmatprep.subr.bf16.mxu0 %v626_v16  ;;  %p801_p5 = por %p800_p4, %p799_p3 }
  0x2c   :  { %657 = vmatpush3.bf16.msra.mxu1 %v656_v12  ;;  %v658_v21 = vpack.c.bf16 %v99_v19, %v98_v18  ;;  %v83_v22 = vld [vmem:[#allocation5 + $0x118] sm:$0xff]  ;;  %v630_v26 = vpack.c.bf16 %v69_v24, %v68_v23  ;;  %v52_v27 = vld [vmem:[#allocation5 + $0x20] sm:$0xff]  ;;  %v53_v28 = vld [vmem:[#allocation5 + $0x28] sm:$0xff] }
  0x2d   :  { %v660_v25 = vpack.c.bf16 %v83_v22, %v82_v20  ;;  %v100_v29 = vld [vmem:[#allocation5 + $0x1a0] sm:$0xff]  ;;  %v101_v30 = vld [vmem:[#allocation5 + $0x1a8] sm:$0xff]  ;;  %v632_v33 = vpack.c.bf16 %v53_v28, %v52_v27  ;;  %v70_v35 = vld [vmem:[#allocation5 + $0xb0] sm:$0xff]  ;;  %p802_p6 = pnand %p801_p5, %p795_p2 }
  0x2e   :  { %659 = vmatprep.subr.bf16.mxu1 %v658_v21  ;;  %v84_v31 = vld [vmem:[#allocation5 + $0x120] sm:$0xff]  ;;  %v85_v32 = vld [vmem:[#allocation5 + $0x128] sm:$0xff]  ;;  %629 = vmatpush3.bf16.msra.mxu0 %v628_v17  ;;  %v662_v34 = vpack.c.bf16 %v101_v30, %v100_v29  ;;  %v71_v36 = vld [vmem:[#allocation5 + $0xb8] sm:$0xff] }
  0x2f   :  { %v54_v37 = vld [vmem:[#allocation5 + $0x30] sm:$0xff]  ;;  %631 = vmatprep.subr.bf16.mxu0 %v630_v26  ;;  %v664_v38 = vpack.c.bf16 %v85_v32, %v84_v31  ;;  %v634_v39 = vpack.c.bf16 %v71_v36, %v70_v35  ;;  %v55_v40 = vld [vmem:[#allocation5 + $0x38] sm:$0xff]  ;;  %v72_v46 = vld [vmem:[#allocation5 + $0xc0] sm:$0xff] }
  0x30   :  { %661 = vmatpush3.bf16.msra.mxu1 %v660_v25  ;;  %v102_v41 = vld [vmem:[#allocation5 + $0x1b0] sm:$0xff]  ;;  %v103_v42 = vld [vmem:[#allocation5 + $0x1b8] sm:$0xff]  ;;  %v73_v47 = vld [vmem:[#allocation5 + $0xc8] sm:$0xff]  ;;  %v636_v48 = vpack.c.bf16 %v55_v40, %v54_v37 }
  0x31   :  { %663 = vmatprep.subr.bf16.mxu1 %v662_v34  ;;  %v666_v43 = vpack.c.bf16 %v103_v42, %v102_v41  ;;  %v86_v44 = vld [vmem:[#allocation5 + $0x130] sm:$0xff]  ;;  %v87_v45 = vld [vmem:[#allocation5 + $0x138] sm:$0xff]  ;;  %v104_v49 = vld [vmem:[#allocation5 + $0x1c0] sm:$0xff]  ;;  %v638_v52 = vpack.c.bf16 %v73_v47, %v72_v46 }
  0x32   :  { %633 = vmatpush3.bf16.msra.mxu0 %v632_v33  ;;  %v105_v50 = vld [vmem:[#allocation5 + $0x1c8] sm:$0xff]  ;;  %v668_v51 = vpack.c.bf16 %v87_v45, %v86_v44  ;;  %v56_v53 = vld [vmem:[#allocation5 + $0x40] sm:$0xff]  ;;  %v74_v58 = vld [vmem:[#allocation5 + $0xd0] sm:$0xff] }
  0x33   :  { %635 = vmatprep.subr.bf16.mxu0 %v634_v39  ;;  %v57_v54 = vld [vmem:[#allocation5 + $0x48] sm:$0xff]  ;;  %v88_v55 = vld [vmem:[#allocation5 + $0x140] sm:$0xff]  ;;  %v670_v56 = vpack.c.bf16 %v105_v50, %v104_v49  ;;  %v75_v59 = vld [vmem:[#allocation5 + $0xd8] sm:$0xff] }
  0x34   :  { %665 = vmatpush3.bf16.msra.mxu1 %v664_v38  ;;  %v89_v57 = vld [vmem:[#allocation5 + $0x148] sm:$0xff]  ;;  %v106_v60 = vld [vmem:[#allocation5 + $0x1d0] sm:$0xff]  ;;  %v107_v61 = vld [vmem:[#allocation5 + $0x1d8] sm:$0xff]  ;;  %v640_v62 = vpack.c.bf16 %v57_v54, %v56_v53  ;;  %v642_v0 = vpack.c.bf16 %v75_v59, %v74_v58 }
  0x35   :  { %667 = vmatprep.subr.bf16.mxu1 %v666_v43  ;;  %v672_v63 = vpack.c.bf16 %v89_v57, %v88_v55  ;;  %v58_v1 = vld [vmem:[#allocation5 + $0x50] sm:$0xff]  ;;  %v59_v2 = vld [vmem:[#allocation5 + $0x58] sm:$0xff]  ;;  %v674_v4 = vpack.c.bf16 %v107_v61, %v106_v60  ;;  %v76_v6 = vld [vmem:[#allocation5 + $0xe0] sm:$0xff] }
  0x36   :  { %637 = vmatpush3.bf16.msra.mxu0 %v636_v48  ;;  %v90_v3 = vld [vmem:[#allocation5 + $0x150] sm:$0xff]  ;;  %v91_v5 = vld [vmem:[#allocation5 + $0x158] sm:$0xff]  ;;  %v77_v7 = vld [vmem:[#allocation5 + $0xe8] sm:$0xff]  ;;  %v644_v10 = vpack.c.bf16 %v59_v2, %v58_v1  ;;  %v828_v1 = vmov 0.0  }
  0x37   :  { %639 = vmatprep.subr.bf16.mxu0 %v638_v52  ;;  %v108_v8 = vld [vmem:[#allocation5 + $0x1e0] sm:$0xff]  ;;  %v109_v9 = vld [vmem:[#allocation5 + $0x1e8] sm:$0xff]  ;;  %v42_v12 = vld [vmem:[#allocation2 + $0x8] sm:$0xff]  ;;  %v676_v13 = vpack.c.bf16 %v91_v5, %v90_v3  ;;  %v646_v14 = vpack.c.bf16 %v77_v7, %v76_v6 }
  0x38   :  { %669 = vmatpush3.bf16.msra.mxu1 %v668_v51  ;;  %v60_v11 = vld [vmem:[#allocation5 + $0x60] sm:$0xff]  ;;  %v61_v15 = vld [vmem:[#allocation5 + $0x68] sm:$0xff]  ;;  %v678_v18 = vpack.c.bf16 %v109_v9, %v108_v8  ;;  %v78_v19 = vld [vmem:[#allocation5 + $0xf0] sm:$0xff]  ;;  %231 = vmatprep.mubr.f32.mxu0 %v42_v12  ;;  %v826_v51 = vmov 0.0|0.0  }
  0x39   :  { %671 = vmatprep.subr.bf16.mxu1 %v670_v56  ;;  %v92_v16 = vld [vmem:[#allocation5 + $0x160] sm:$0xff]  ;;  %v93_v17 = vld [vmem:[#allocation5 + $0x168] sm:$0xff]  ;;  %v79_v20 = vld [vmem:[#allocation5 + $0xf8] sm:$0xff]  ;;  %v648_v24 = vpack.c.bf16 %v61_v15, %v60_v11 }
  0x3a   :  { %641 = vmatpush3.bf16.msra.mxu0 %v640_v62  ;;  %v44_v21 = vld [vmem:[#allocation2 + $0x18] sm:$0xff]  ;;  %v110_v22 = vld [vmem:[#allocation5 + $0x1f0] sm:$0xff]  ;;  %v111_v23 = vld [vmem:[#allocation5 + $0x1f8] sm:$0xff]  ;;  %v680_v25 = vpack.c.bf16 %v93_v17, %v92_v16  ;;  %v650_v26 = vpack.c.bf16 %v79_v20, %v78_v19 }
  0x3b   :  { %643 = vmatprep.subr.bf16.mxu0 %v642_v0  ;;  %301 = vmatprep.mubr.f32.mxu1 %v44_v21  ;;  %v62_v27 = vld [vmem:[#allocation5 + $0x70] sm:$0xff]  ;;  %v63_v28 = vld [vmem:[#allocation5 + $0x78] sm:$0xff]  ;;  %v682_v30 = vpack.c.bf16 %v111_v23, %v110_v22  ;;  %v128_v32 = vld [vmem:[#allocation5 + $0x280] sm:$0xff] }
  0x3c   :  { %673 = vmatpush3.bf16.msra.mxu1 %v672_v63  ;;  %v94_v29 = vld [vmem:[#allocation5 + $0x170] sm:$0xff]  ;;  %v95_v31 = vld [vmem:[#allocation5 + $0x178] sm:$0xff]  ;;  %v129_v33 = vld [vmem:[#allocation5 + $0x288] sm:$0xff]  ;;  %v652_v34 = vpack.c.bf16 %v63_v28, %v62_v27 }
  0x3d   :  { %675 = vmatprep.subr.bf16.mxu1 %v674_v4  ;;  %v684_v35 = vpack.c.bf16 %v95_v31, %v94_v29  ;;  %v686_v36 = vpack.c.bf16 %v129_v33, %v128_v32  ;;  %v112_v37 = vld [vmem:[#allocation5 + $0x200] sm:$0xff]  ;;  %v113_v38 = vld [vmem:[#allocation5 + $0x208] sm:$0xff]  ;;  %v130_v39 = vld [vmem:[#allocation5 + $0x290] sm:$0xff] }
  0x3e   :  { %645 = vmatpush3.bf16.msra.mxu0 %v644_v10  ;;  %v131_v40 = vld [vmem:[#allocation5 + $0x298] sm:$0xff]  ;;  %v144_v41 = vld [vmem:[#allocation5 + $0x300] sm:$0xff]  ;;  %v145_v42 = vld [vmem:[#allocation5 + $0x308] sm:$0xff]  ;;  %v688_v44 = vpack.c.bf16 %v113_v38, %v112_v37 }
  0x3f   :  { %647 = vmatprep.subr.bf16.mxu0 %v646_v14  ;;  %v41_v43 = vld [vmem:[#allocation2] sm:$0xff]  ;;  %v43_v45 = vld [vmem:[#allocation2 + $0x10] sm:$0xff]  ;;  %v690_v46 = vpack.c.bf16 %v131_v40, %v130_v39  ;;  %v114_v47 = vld [vmem:[#allocation5 + $0x210] sm:$0xff]  ;;  %v719_v49 = vpack.c.bf16 %v145_v42, %v144_v41 }
  0x40   :  { %677 = vmatpush3.bf16.msra.mxu1 %v676_v13  ;;  %v115_v48 = vld [vmem:[#allocation5 + $0x218] sm:$0xff]  ;;  %v132_v50 = vld [vmem:[#allocation5 + $0x2a0] sm:$0xff]  ;;  %v133_v52 = vld [vmem:[#allocation5 + $0x2a8] sm:$0xff] }
  0x41   :  { %679 = vmatprep.subr.bf16.mxu1 %v678_v18  ;;  %v146_v53 = vld [vmem:[#allocation5 + $0x310] sm:$0xff]  ;;  %v147_v54 = vld [vmem:[#allocation5 + $0x318] sm:$0xff]  ;;  %v692_v55 = vpack.c.bf16 %v115_v48, %v114_v47  ;;  %v116_v56 = vld [vmem:[#allocation5 + $0x220] sm:$0xff]  ;;  %v694_v57 = vpack.c.bf16 %v133_v52, %v132_v50 }
  0x42   :  { %649 = vmatpush3.bf16.msra.mxu0 %v648_v24  ;;  %v117_v58 = vld [vmem:[#allocation5 + $0x228] sm:$0xff]  ;;  %v722_v59 = vpack.c.bf16 %v147_v54, %v146_v53  ;;  %v134_v60 = vld [vmem:[#allocation5 + $0x2b0] sm:$0xff]  ;;  %v135_v61 = vld [vmem:[#allocation5 + $0x2b8] sm:$0xff] }
  0x43   :  { %651 = vmatprep.subr.bf16.mxu0 %v650_v26  ;;  %v148_v62 = vld [vmem:[#allocation5 + $0x320] sm:$0xff]  ;;  %v149_v63 = vld [vmem:[#allocation5 + $0x328] sm:$0xff]  ;;  %v46_v0 = vld [vmem:[#allocation2 + $0x28] sm:$0xff]  ;;  %v696_v2 = vpack.c.bf16 %v117_v58, %v116_v56  ;;  %v698_v3 = vpack.c.bf16 %v135_v61, %v134_v60 }
  0x44   :  { %681 = vmatpush3.bf16.msra.mxu1 %v680_v25  ;;  %v118_v4 = vld [vmem:[#allocation5 + $0x230] sm:$0xff]  ;;  %v119_v5 = vld [vmem:[#allocation5 + $0x238] sm:$0xff]  ;;  %v725_v6 = vpack.c.bf16 %v149_v63, %v148_v62  ;;  %v136_v7 = vld [vmem:[#allocation5 + $0x2c0] sm:$0xff] }
  0x45   :  { %683 = vmatprep.subr.bf16.mxu1 %v682_v30  ;;  %v137_v8 = vld [vmem:[#allocation5 + $0x2c8] sm:$0xff]  ;;  %v150_v9 = vld [vmem:[#allocation5 + $0x330] sm:$0xff]  ;;  %v151_v10 = vld [vmem:[#allocation5 + $0x338] sm:$0xff]  ;;  %v700_v11 = vpack.c.bf16 %v119_v5, %v118_v4 }
  0x46   :  { %653 = vmatpush3.bf16.msra.mxu0 %v652_v34  ;;  %v702_v12 = vpack.c.bf16 %v137_v8, %v136_v7  ;;  %v120_v13 = vld [vmem:[#allocation5 + $0x240] sm:$0xff]  ;;  %v121_v14 = vld [vmem:[#allocation5 + $0x248] sm:$0xff]  ;;  %v728_v15 = vpack.c.bf16 %v151_v10, %v150_v9  ;;  %v138_v16 = vld [vmem:[#allocation5 + $0x2d0] sm:$0xff] }
  0x47   :  { %687 = vmatprep.subr.bf16.mxu0 %v686_v36  ;;  %v139_v17 = vld [vmem:[#allocation5 + $0x2d8] sm:$0xff]  ;;  %v152_v18 = vld [vmem:[#allocation5 + $0x340] sm:$0xff]  ;;  %v153_v19 = vld [vmem:[#allocation5 + $0x348] sm:$0xff]  ;;  %v704_v20 = vpack.c.bf16 %v121_v14, %v120_v13 }
  0x48   :  { %685 = vmatpush3.bf16.msra.mxu1 %v684_v35  ;;  %v706_v21 = vpack.c.bf16 %v139_v17, %v138_v16  ;;  %v122_v22 = vld [vmem:[#allocation5 + $0x250] sm:$0xff]  ;;  %v123_v23 = vld [vmem:[#allocation5 + $0x258] sm:$0xff]  ;;  %v731_v24 = vpack.c.bf16 %v153_v19, %v152_v18  ;;  %v140_v25 = vld [vmem:[#allocation5 + $0x2e0] sm:$0xff] }
  0x49   :  { %718 = vmatprep.subr.bf16.mxu1 %v826_v51  ;;  %232 = vmatmul.mubr.f32.vlgmr.msra.gmra.mrb[0].mxu0 %v41_v43  ;;  %v141_v26 = vld [vmem:[#allocation5 + $0x2e8] sm:$0xff]  ;;  %v154_v27 = vld [vmem:[#allocation5 + $0x350] sm:$0xff]  ;;  %v155_v28 = vld [vmem:[#allocation5 + $0x358] sm:$0xff]  ;;  %v708_v29 = vpack.c.bf16 %v123_v23, %v122_v22 }
  0x4a   :  { %689 = vmatpush3.bf16.msra.mxu0 %v688_v44  ;;  %371 = vmatprep.mubr.f32.mxu0 %v46_v0  ;;  %v710_v30 = vpack.c.bf16 %v141_v26, %v140_v25  ;;  %v124_v31 = vld [vmem:[#allocation5 + $0x260] sm:$0xff]  ;;  %v125_v32 = vld [vmem:[#allocation5 + $0x268] sm:$0xff]  ;;  %v734_v33 = vpack.c.bf16 %v155_v28, %v154_v27  ;;  %v142_v34 = vld [vmem:[#allocation5 + $0x2f0] sm:$0xff] }
  0x4b   :  { %302 = vmatmul.mubr.f32.vlgmr.msra.gmra.mrb[0].mxu1 %v43_v45  ;;  %691 = vmatprep.subr.bf16.mxu0 %v690_v46  ;;  %v143_v35 = vld [vmem:[#allocation5 + $0x2f8] sm:$0xff]  ;;  %v156_v36 = vld [vmem:[#allocation5 + $0x360] sm:$0xff]  ;;  %v157_v37 = vld [vmem:[#allocation5 + $0x368] sm:$0xff]  ;;  %v712_v38 = vpack.c.bf16 %v125_v32, %v124_v31 }
  0x4c   :  { %720 = vmatpush3.bf16.msra.mxu1 %v719_v49  ;;  %619 = vmatprep.mubr.msk.f32.mxu1 %vm827_vm0, %v828_v1  ;;  %v714_v39 = vpack.c.bf16 %v143_v35, %v142_v34  ;;  %v126_v40 = vld [vmem:[#allocation5 + $0x270] sm:$0xff]  ;;  %v127_v41 = vld [vmem:[#allocation5 + $0x278] sm:$0xff]  ;;  %v737_v42 = vpack.c.bf16 %v157_v37, %v156_v36  ;;  %v45_v47 = vld [vmem:[#allocation2 + $0x20] sm:$0xff] }
  0x4d   :  { %721 = vmatprep.subr.bf16.mxu1 %v826_v51  ;;  %v158_v43 = vld [vmem:[#allocation5 + $0x370] sm:$0xff]  ;;  %v159_v44 = vld [vmem:[#allocation5 + $0x378] sm:$0xff]  ;;  %v716_v45 = vpack.c.bf16 %v127_v41, %v126_v40  ;;  %v464_v50 = vld [vmem:[%s906_s2] ss:$0 sm:$0xff] }
  0x4e   :  { %693 = vmatpush3.bf16.msra.mxu0 %v692_v55  ;;  %v740_v46 = vpack.c.bf16 %v159_v44, %v158_v43  ;;  %v47_v48 = vld [vmem:[#allocation2 + $0x30] sm:$0xff] }
  0x4f   :  { %695 = vmatprep.subr.bf16.mxu0 %v694_v57 }
  0x50   :  { %723 = vmatpush3.bf16.msra.mxu1 %v722_v59 }
  0x51   :  { %724 = vmatprep.subr.bf16.mxu1 %v826_v51 }
  0x52   :  { %697 = vmatpush3.bf16.msra.mxu0 %v696_v2 }
  0x53   :  { %699 = vmatprep.subr.bf16.mxu0 %v698_v3 }
  0x54   :  { %726 = vmatpush3.bf16.msra.mxu1 %v725_v6 }
  0x55   :  { %727 = vmatprep.subr.bf16.mxu1 %v826_v51 }
  0x56   :  { %701 = vmatpush3.bf16.msra.mxu0 %v700_v11 }
  0x57   :  { %703 = vmatprep.subr.bf16.mxu0 %v702_v12 }
  0x58   :  { %729 = vmatpush3.bf16.msra.mxu1 %v728_v15 }
  0x59   :  { %730 = vmatprep.subr.bf16.mxu1 %v826_v51 }
  0x5a   :  { %705 = vmatpush3.bf16.msra.mxu0 %v704_v20 }
  0x5b   :  { %707 = vmatprep.subr.bf16.mxu0 %v706_v21 }
  0x5c   :  { %732 = vmatpush3.bf16.msra.mxu1 %v731_v24 }
  0x5d   :  { %733 = vmatprep.subr.bf16.mxu1 %v826_v51 }
  0x5e   :  { %709 = vmatpush3.bf16.msra.mxu0 %v708_v29 }
  0x5f   :  { %711 = vmatprep.subr.bf16.mxu0 %v710_v30 }
  0x60   :  { %735 = vmatpush3.bf16.msra.mxu1 %v734_v33 }
  0x61   :  { %736 = vmatprep.subr.bf16.mxu1 %v826_v51 }
  0x62   :  { %713 = vmatpush3.bf16.msra.mxu0 %v712_v38 }
  0x63   :  { %715 = vmatprep.subr.bf16.mxu0 %v714_v39 }
  0x64   :  { %738 = vmatpush3.bf16.msra.mxu1 %v737_v42 }
  0x65   :  { %739 = vmatprep.subr.bf16.mxu1 %v826_v51 }
  0x66   :  { %717 = vmatpush3.bf16.msra.mxu0 %v716_v45 }
  0x68   :  { %741 = vmatpush3.bf16.msra.mxu1 %v740_v46 }
  0x69   :  { %372 = vmatmul.mubr.f32.vlgmr.msra.gmra.mrb[2].mxu0 %v45_v47 }
  0x6b   :  { %620 = vmatmul.mubr.f32.vlgmr.msra.gmra.mrb[2].mxu1 %v47_v48 }
 0x11c   :  { %v497_v49 = vpop.f32.mrb[0].mxu0 }
 0x11d   :  { %v498_v52 = vpop.f32.mrb[1].mxu0 }
 0x11e   :  { %v532_v53 = vpop.f32.mrb[0].mxu1  ;;  %v499_v54 = vadd.f32 %v498_v52, %v497_v49 }
 0x11f   :  { %v533_v55 = vpop.f32.mrb[1].mxu1 }
 0x120   :  { %v534_v56 = vadd.f32 %v533_v55, %v532_v53  ;;  %v234_v57 = vadd.f32 %v499_v54, %v464_v50 }
 0x122   :  { %v304_v58 = vadd.f32 %v534_v56, %v234_v57 }
 0x13c   :  { %v567_v59 = vpop.f32.mrb[2].mxu0 }
 0x13d   :  { %v568_v51 = vpop.f32.mrb[3].mxu0 }
 0x13e   :  { %v443_v60 = vpop.f32.mrb[2].mxu1  ;;  %v569_v61 = vadd.f32 %v568_v51, %v567_v59 }
 0x13f   :  { %v621_v62 = vpop.f32.mrb[3].mxu1 }
 0x140   :  { %v374_v63 = vadd.f32 %v569_v61, %v304_v58 }
 0x142   :  { %v444_v0 = vadd.f32 %v443_v60, %v374_v63 }
 0x144   :  { %447 = vst [vmem:[#allocation7] sm:$0xff] %v444_v0 }
 0x145   :  { %805 = shalt.err (!%p802_p6)
}
 0x146   :  { %s806_s15 = scalar_lea.hbm %s907_s3, 128 }
 0x147   :  { %p807_p7 = scmp.ne.s32.totalorder %s907_s3, %s806_s15  ;;  %p810_p8 = scmp.lt.u32.totalorder %s806_s15, %s907_s3 }
 0x149   :  { %p812_p9 = pnand %p810_p8, %p807_p7 }
 0x14b   :  { %815 = shalt.err (!%p812_p9)
}
 0x14c   :  { %457 = dma.vmem_to_hbm [thread:$0]  %s455_s12, 128, %s907_s3, [#allocation4]  }
 0x14d   :  { %820 = dma.done.wait [#allocation4], 128  }
 0x14e   :  { %821 = vsyncadd [#allocation4], 4294967168 }
 0x14f   :  { %461 = vsyncpa [#allocation3], 1 }
 0x150   :  { %462 = vsyncpa [#allocation6], 1 }
 0x151   :  { %463 = vsyncpa [#allocation4], 1 }

</bundles_post_ra>
